<compile_context>
chip_gen: v7x
topology: tpu7x:2x2x1
jax: 0.10.0
libtpu: 0.0.40
codegen_flags: <defaults>
</compile_context>

<pallas_src>
import jax
import jax.numpy as jnp
from jax.experimental import pallas as pl
from jax.experimental.pallas import tpu as pltpu


def _make_pos_embed_kernel(F, H, W, HW_pad):
    """Build the grid-less kernel for static (F, H, W)."""
    HW = H * W

    def kernel(emb_ref, out_ref):
        # emb_ref: (2F, max(H, W))  rows [0:F)  = col_embed[:W].T (lane-padded)
        #                           rows [F:2F) = row_embed[:H].T (lane-padded)
        # out_ref: (2F, HW_pad)     per-batch NCHW result, lane-flattened over (H, W)
        xT = emb_ref[:F, :W]          # (F, W)  col embeddings, transposed
        yT = emb_ref[F:, :H]          # (F, H)  row embeddings, transposed

        # x half: out[c, h*W + w] = col_embed[w, c]
        #   -> lane-concat of H identical copies of the W-block (no MXU, no reshape).
        x_full = jnp.concatenate([xT] * H, axis=-1)                        # (F, H*W)

        # y half: out[F + c, h*W + w] = row_embed[h, c]
        #   -> per-row lane broadcast (F,1)->(F,W), then lane-concat; stays 2-D
        #      so no minor-dim reshape / relayout is needed.
        y_full = jnp.concatenate(
            [jnp.broadcast_to(yT[:, h:h + 1], (F, W)) for h in range(H)],
            axis=-1)                                                       # (F, H*W)

        if HW_pad != HW:
            # Lane padding region (sliced off in the wrapper) — keep it defined.
            out_ref[...] = jnp.zeros_like(out_ref)
        out_ref[:F, :HW] = x_full
        out_ref[F:, :HW] = y_full

    return kernel


def position_embedding_learned(x, mask, col_weight, row_weight):
    """Equivalent of PositionEmbeddingLearned.forward(x, mask).

    x:          (B, C, H, W)  -- only the shape is used (as in PyTorch)
    mask:       unused (kept for API parity with the torch module)
    col_weight: (50, F) learned col embedding table
    row_weight: (50, F) learned row embedding table

    returns: (B, 2*F, H, W) float32, identical semantics to the torch module.
    """
    del mask  # unused in the reference forward as well
    B = x.shape[0]
    H, W = int(x.shape[-2]), int(x.shape[-1])
    F = col_weight.shape[-1]
    if H > row_weight.shape[0] or W > col_weight.shape[0]:
        raise ValueError(
            f"spatial size ({H}, {W}) exceeds embedding table rows "
            f"({row_weight.shape[0]}, {col_weight.shape[0]})")

    HW = H * W
    HW_pad = -(-HW // 128) * 128          # lane-dense output (pad up to mult. of 128)
    WHmax = max(H, W)

    # Embedding lookup of arange(W)/arange(H) is a leading-row slice; pack both tiny
    # transposed tables into ONE input slab -> exactly 1 input DMA + 1 output DMA.
    xT = col_weight[:W].T.astype(jnp.float32)                      # (F, W)
    yT = row_weight[:H].T.astype(jnp.float32)                      # (F, H)
    packed = jnp.concatenate(
        [jnp.pad(xT, ((0, 0), (0, WHmax - W))),
         jnp.pad(yT, ((0, 0), (0, WHmax - H)))], axis=0)           # (2F, WHmax)

    pos_flat = pl.pallas_call(
        _make_pos_embed_kernel(F, H, W, HW_pad),
        out_shape=jax.ShapeDtypeStruct((2 * F, HW_pad), jnp.float32),
        # Grid-less single invocation: whole arrays live in VMEM, no pipeline or
        # double-buffering machinery for a one-step kernel.
        in_specs=[pl.BlockSpec(memory_space=pltpu.MemorySpace.VMEM)],
        out_specs=pl.BlockSpec(memory_space=pltpu.MemorySpace.VMEM),
    )(packed)

    # Free contiguous reshape to the NCHW slab, then broadcast over batch.
    # TODO(synk): ideally return the (2F, H, W) slab / fuse into the consumer so the
    # batch broadcast never materializes B copies in HBM.
    pos = pos_flat[:, :HW].reshape(2 * F, H, W)
    return jnp.broadcast_to(pos[None], (B, 2 * F, H, W))


def _reference(x, col_weight, row_weight):
    """Pure-JAX reference mirroring the torch forward."""
    B = x.shape[0]
    H, W = x.shape[-2:]
    x_emb = col_weight[:W]                                   # (W, F)
    y_emb = row_weight[:H]                                   # (H, F)
    pos = jnp.concatenate(
        [jnp.broadcast_to(x_emb[None, :, :], (H, W, x_emb.shape[-1])),
         jnp.broadcast_to(y_emb[:, None, :], (H, W, y_emb.shape[-1]))],
        axis=-1)                                             # (H, W, 2F)
    pos = jnp.transpose(pos, (2, 0, 1))[None]                # (1, 2F, H, W)
    return jnp.broadcast_to(pos, (B,) + pos.shape[1:])


if __name__ == "__main__":
    # Module config: num_pos_feats=32 (small), embedding tables are (50, 32).
    num_pos_feats = 32
    B, C, H, W = 2, 4, 16, 16

    key = jax.random.PRNGKey(0)
    k_x, k_row, k_col = jax.random.split(key, 3)

    # nn.init.uniform_ -> U[0, 1)
    row_weight = jax.random.uniform(k_row, (50, num_pos_feats), dtype=jnp.float32)
    col_weight = jax.random.uniform(k_col, (50, num_pos_feats), dtype=jnp.float32)

    x = jax.random.normal(k_x, (B, C, H, W), dtype=jnp.float32)
    mask = jnp.zeros((B, H, W), dtype=jnp.bool_)  # unused, parity with torch API

    fwd = jax.jit(position_embedding_learned)
    pos = fwd(x, mask, col_weight, row_weight)
    pos = jax.block_until_ready(pos)

    ref = _reference(x, col_weight, row_weight)
    assert pos.shape == (B, 2 * num_pos_feats, H, W), pos.shape
    assert jnp.allclose(pos, ref, rtol=1e-6, atol=1e-6), "mismatch vs reference"

    print("KERNEL_OK")
</pallas_src>

<mosaic_0001>
module attributes {stable_mosaic.version = 11 : i64} {
  func.func @kernel(%arg0: memref<64x16xf32, #tpu.memory_space<vmem>>, %arg1: memref<64x256xf32, #tpu.memory_space<vmem>>) attributes {dimension_semantics = [], scalar_prefetch = 0 : i64, scratch_operands = 0 : i64, tpu.core_type = #tpu.core_type<tc>} {
    %c0 = arith.constant 0 : index
    %c0_0 = arith.constant 0 : index
    %0 = vector.load %arg0[%c0, %c0_0] : memref<64x16xf32, #tpu.memory_space<vmem>>, vector<32x16xf32>
    %c32 = arith.constant 32 : index
    %c0_1 = arith.constant 0 : index
    %1 = vector.load %arg0[%c32, %c0_1] : memref<64x16xf32, #tpu.memory_space<vmem>>, vector<32x16xf32>
    %2 = tpu.concatenate %0, %0, %0, %0, %0, %0, %0, %0, %0, %0, %0, %0, %0, %0, %0, %0 in 1 : vector<32x16xf32>, vector<32x16xf32>, vector<32x16xf32>, vector<32x16xf32>, vector<32x16xf32>, vector<32x16xf32>, vector<32x16xf32>, vector<32x16xf32>, vector<32x16xf32>, vector<32x16xf32>, vector<32x16xf32>, vector<32x16xf32>, vector<32x16xf32>, vector<32x16xf32>, vector<32x16xf32>, vector<32x16xf32> -> vector<32x256xf32>
    %3 = vector.extract_strided_slice %1 {offsets = [0, 0], sizes = [32, 1], strides = [1, 1]} : vector<32x16xf32> to vector<32x1xf32>
    %4 = vector.shape_cast %3 : vector<32x1xf32> to vector<32x1xf32>
    %5 = vector.broadcast %4 : vector<32x1xf32> to vector<32x16xf32>
    %6 = vector.extract_strided_slice %1 {offsets = [0, 1], sizes = [32, 1], strides = [1, 1]} : vector<32x16xf32> to vector<32x1xf32>
    %7 = vector.shape_cast %6 : vector<32x1xf32> to vector<32x1xf32>
    %8 = vector.broadcast %7 : vector<32x1xf32> to vector<32x16xf32>
    %9 = vector.extract_strided_slice %1 {offsets = [0, 2], sizes = [32, 1], strides = [1, 1]} : vector<32x16xf32> to vector<32x1xf32>
    %10 = vector.shape_cast %9 : vector<32x1xf32> to vector<32x1xf32>
    %11 = vector.broadcast %10 : vector<32x1xf32> to vector<32x16xf32>
    %12 = vector.extract_strided_slice %1 {offsets = [0, 3], sizes = [32, 1], strides = [1, 1]} : vector<32x16xf32> to vector<32x1xf32>
    %13 = vector.shape_cast %12 : vector<32x1xf32> to vector<32x1xf32>
    %14 = vector.broadcast %13 : vector<32x1xf32> to vector<32x16xf32>
    %15 = vector.extract_strided_slice %1 {offsets = [0, 4], sizes = [32, 1], strides = [1, 1]} : vector<32x16xf32> to vector<32x1xf32>
    %16 = vector.shape_cast %15 : vector<32x1xf32> to vector<32x1xf32>
    %17 = vector.broadcast %16 : vector<32x1xf32> to vector<32x16xf32>
    %18 = vector.extract_strided_slice %1 {offsets = [0, 5], sizes = [32, 1], strides = [1, 1]} : vector<32x16xf32> to vector<32x1xf32>
    %19 = vector.shape_cast %18 : vector<32x1xf32> to vector<32x1xf32>
    %20 = vector.broadcast %19 : vector<32x1xf32> to vector<32x16xf32>
    %21 = vector.extract_strided_slice %1 {offsets = [0, 6], sizes = [32, 1], strides = [1, 1]} : vector<32x16xf32> to vector<32x1xf32>
    %22 = vector.shape_cast %21 : vector<32x1xf32> to vector<32x1xf32>
    %23 = vector.broadcast %22 : vector<32x1xf32> to vector<32x16xf32>
    %24 = vector.extract_strided_slice %1 {offsets = [0, 7], sizes = [32, 1], strides = [1, 1]} : vector<32x16xf32> to vector<32x1xf32>
    %25 = vector.shape_cast %24 : vector<32x1xf32> to vector<32x1xf32>
    %26 = vector.broadcast %25 : vector<32x1xf32> to vector<32x16xf32>
    %27 = vector.extract_strided_slice %1 {offsets = [0, 8], sizes = [32, 1], strides = [1, 1]} : vector<32x16xf32> to vector<32x1xf32>
    %28 = vector.shape_cast %27 : vector<32x1xf32> to vector<32x1xf32>
    %29 = vector.broadcast %28 : vector<32x1xf32> to vector<32x16xf32>
    %30 = vector.extract_strided_slice %1 {offsets = [0, 9], sizes = [32, 1], strides = [1, 1]} : vector<32x16xf32> to vector<32x1xf32>
    %31 = vector.shape_cast %30 : vector<32x1xf32> to vector<32x1xf32>
    %32 = vector.broadcast %31 : vector<32x1xf32> to vector<32x16xf32>
    %33 = vector.extract_strided_slice %1 {offsets = [0, 10], sizes = [32, 1], strides = [1, 1]} : vector<32x16xf32> to vector<32x1xf32>
    %34 = vector.shape_cast %33 : vector<32x1xf32> to vector<32x1xf32>
    %35 = vector.broadcast %34 : vector<32x1xf32> to vector<32x16xf32>
    %36 = vector.extract_strided_slice %1 {offsets = [0, 11], sizes = [32, 1], strides = [1, 1]} : vector<32x16xf32> to vector<32x1xf32>
    %37 = vector.shape_cast %36 : vector<32x1xf32> to vector<32x1xf32>
    %38 = vector.broadcast %37 : vector<32x1xf32> to vector<32x16xf32>
    %39 = vector.extract_strided_slice %1 {offsets = [0, 12], sizes = [32, 1], strides = [1, 1]} : vector<32x16xf32> to vector<32x1xf32>
    %40 = vector.shape_cast %39 : vector<32x1xf32> to vector<32x1xf32>
    %41 = vector.broadcast %40 : vector<32x1xf32> to vector<32x16xf32>
    %42 = vector.extract_strided_slice %1 {offsets = [0, 13], sizes = [32, 1], strides = [1, 1]} : vector<32x16xf32> to vector<32x1xf32>
    %43 = vector.shape_cast %42 : vector<32x1xf32> to vector<32x1xf32>
    %44 = vector.broadcast %43 : vector<32x1xf32> to vector<32x16xf32>
    %45 = vector.extract_strided_slice %1 {offsets = [0, 14], sizes = [32, 1], strides = [1, 1]} : vector<32x16xf32> to vector<32x1xf32>
    %46 = vector.shape_cast %45 : vector<32x1xf32> to vector<32x1xf32>
    %47 = vector.broadcast %46 : vector<32x1xf32> to vector<32x16xf32>
    %48 = vector.extract_strided_slice %1 {offsets = [0, 15], sizes = [32, 1], strides = [1, 1]} : vector<32x16xf32> to vector<32x1xf32>
    %49 = vector.shape_cast %48 : vector<32x1xf32> to vector<32x1xf32>
    %50 = vector.broadcast %49 : vector<32x1xf32> to vector<32x16xf32>
    %51 = tpu.concatenate %5, %8, %11, %14, %17, %20, %23, %26, %29, %32, %35, %38, %41, %44, %47, %50 in 1 : vector<32x16xf32>, vector<32x16xf32>, vector<32x16xf32>, vector<32x16xf32>, vector<32x16xf32>, vector<32x16xf32>, vector<32x16xf32>, vector<32x16xf32>, vector<32x16xf32>, vector<32x16xf32>, vector<32x16xf32>, vector<32x16xf32>, vector<32x16xf32>, vector<32x16xf32>, vector<32x16xf32>, vector<32x16xf32> -> vector<32x256xf32>
    %c0_2 = arith.constant 0 : index
    %c0_3 = arith.constant 0 : index
    %52 = vector.load %arg1[%c0_2, %c0_3] : memref<64x256xf32, #tpu.memory_space<vmem>>, vector<32x256xf32>
    tpu.vector_store %arg1[%c0_2, %c0_3], %2 {strides = array<i32>} : memref<64x256xf32, #tpu.memory_space<vmem>>, vector<32x256xf32>,
    %c32_4 = arith.constant 32 : index
    %c0_5 = arith.constant 0 : index
    %53 = vector.load %arg1[%c32_4, %c0_5] : memref<64x256xf32, #tpu.memory_space<vmem>>, vector<32x256xf32>
    tpu.vector_store %arg1[%c32_4, %c0_5], %51 {strides = array<i32>} : memref<64x256xf32, #tpu.memory_space<vmem>>, vector<32x256xf32>,
    return
  }
}

</mosaic_0001>

<bundles_post_ra>
// kernel: position_embedding_learned.1
= control target key start
LH: loop header
LB: loop body
LE: loop exit
PB: predicated region body
PF: predicated region fallthrough
CT: control target
= control target key end

     0   :  { %v530_v1 = vmov 0   ;;  %s531_s8 = smov 16   ;;  %s532_s15 = smov 32   ;;  %v538_v9 = vmov 1   ;;  %v539_v10 = vmov 2   ;;  %v540_v11 = vmov 3   ;;  %s859_s0 = inlined_call_operand.vmem [shape: f32[64,16], index: 0, kind: input, shape index: {}]   ;;  %s860_s1 = inlined_call_operand.vmem [shape: f32[64,256], index: 1, kind: output, shape index: {}]  }
   0x1   :  { %v566_v0 = vld [vmem:[%s859_s0 + $0x10] sm:$0xff]  ;;  %499 = vset.pattern.permute.xlu1 %v530_v1  ;;  %498 = vset.pattern.permute.xlu0 %v530_v1  ;;  %v572_v2 = vld [vmem:[%s859_s0] sm:$0xff]  ;;  %v578_v3 = vld [vmem:[%s859_s0 + $0x18] sm:$0xff]  ;;  %s533_s16 = smov 48   ;;  %s534_s17 = smov 64   ;;  %v541_v12 = vmov 4  }
   0x2   :  { %24 = vrot.lane.b32.xlu1 %v566_v0, %s531_s8  ;;  %20 = vrot.lane.b32.xlu0 %v572_v2, %s531_s8  ;;  %v583_v4 = vld [vmem:[%s859_s0 + $0x8] sm:$0xff]  ;;  %s535_s18 = smov 80   ;;  %s536_s19 = smov 96   ;;  %v619_v6 = vld [vmem:[%s859_s0 + $0x20] sm:$0xff]  ;;  %v542_v13 = vmov 5   ;;  %v543_v14 = vmov 6  }
   0x3   :  { %s537_s20 = smov 112   ;;  %v613_v5 = vld [vmem:[%s859_s0 + $0x28] sm:$0xff]  ;;  %v625_v7 = vld [vmem:[%s859_s0 + $0x30] sm:$0xff]  ;;  %v631_v8 = vld [vmem:[%s859_s0 + $0x38] sm:$0xff]  ;;  %v544_v15 = vmov 7   ;;  %v545_v16 = vmov 8  }
   0x4   :  { %v546_v21 = vmov 9   ;;  %v547_v25 = vmov 10   ;;  %v548_v31 = vmov 11   ;;  %v549_v34 = vmov 12  }
   0x5   :  { %vm104_vm0 = vcmask 130048   ;;  %vm109_vm1 = vcmask 261120   ;;  %v550_v41 = vmov 13   ;;  %vm114_vm2 = vcmask 392192  }
   0x6   :  { %26 = vrot.lane.b32.xlu1 %v578_v3, %s531_s8  ;;  %22 = vrot.lane.b32.xlu0 %v583_v4, %s531_s8  ;;  %vm119_vm3 = vcmask 523264   ;;  %v551_v46 = vmov 14   ;;  %vm124_vm4 = vcmask 654336   ;;  %vm129_vm5 = vcmask 785408  }
   0x7   :  { %vm134_vm6 = vcmask 916480  }
   0xa   :  { %34 = vrot.lane.b32.xlu1 %v583_v4, %s532_s15  ;;  %32 = vrot.lane.b32.xlu0 %v572_v2, %s532_s15 }
   0xe   :  { %38 = vrot.lane.b32.xlu1 %v578_v3, %s532_s15  ;;  %36 = vrot.lane.b32.xlu0 %v566_v0, %s532_s15 }
  0x12   :  { %46 = vrot.lane.b32.xlu1 %v583_v4, %s533_s16  ;;  %44 = vrot.lane.b32.xlu0 %v572_v2, %s533_s16 }
  0x16   :  { %50 = vrot.lane.b32.xlu1 %v578_v3, %s533_s16  ;;  %48 = vrot.lane.b32.xlu0 %v566_v0, %s533_s16 }
  0x1a   :  { %58 = vrot.lane.b32.xlu1 %v583_v4, %s534_s17  ;;  %56 = vrot.lane.b32.xlu0 %v572_v2, %s534_s17 }
  0x1e   :  { %62 = vrot.lane.b32.xlu1 %v578_v3, %s534_s17  ;;  %60 = vrot.lane.b32.xlu0 %v566_v0, %s534_s17 }
  0x22   :  { %70 = vrot.lane.b32.xlu1 %v583_v4, %s535_s18  ;;  %68 = vrot.lane.b32.xlu0 %v572_v2, %s535_s18 }
  0x26   :  { %74 = vrot.lane.b32.xlu1 %v578_v3, %s535_s18  ;;  %72 = vrot.lane.b32.xlu0 %v566_v0, %s535_s18 }
  0x2a   :  { %82 = vrot.lane.b32.xlu1 %v583_v4, %s536_s19  ;;  %80 = vrot.lane.b32.xlu0 %v572_v2, %s536_s19 }
  0x2e   :  { %86 = vrot.lane.b32.xlu1 %v578_v3, %s536_s19  ;;  %84 = vrot.lane.b32.xlu0 %v566_v0, %s536_s19 }
  0x32   :  { %94 = vrot.lane.b32.xlu1 %v583_v4, %s537_s20  ;;  %92 = vrot.lane.b32.xlu0 %v572_v2, %s537_s20 }
  0x36   :  { %98 = vrot.lane.b32.xlu1 %v578_v3, %s537_s20  ;;  %96 = vrot.lane.b32.xlu0 %v566_v0, %s537_s20 }
  0x3a   :  { %146 = vperm.xlu1 %499, %v613_v5   ;;  %141 = vperm.xlu0 %498, %v619_v6  }
  0x3e   :  { %151 = vperm.xlu1 %499, %v625_v7   ;;  %156 = vperm.xlu0 %498, %v631_v8  }
  0x42   :  { %500 = vset.pattern.permute.xlu1 %v538_v9  ;;  %501 = vset.pattern.permute.xlu0 %v538_v9 }
  0x43   :  { %160 = vperm.xlu1 %500, %v619_v6   ;;  %164 = vperm.xlu0 %501, %v613_v5  }
  0x47   :  { %168 = vperm.xlu1 %500, %v625_v7   ;;  %502 = vset.pattern.permute.xlu0 %v539_v10 }
  0x48   :  { %176 = vperm.xlu0 %502, %v619_v6  }
  0x4b   :  { %172 = vperm.xlu1 %500, %v631_v8  }
  0x4c   :  { %188 = vperm.xlu0 %502, %v631_v8  }
  0x4f   :  { %503 = vset.pattern.permute.xlu1 %v539_v10 }
  0x50   :  { %180 = vperm.xlu1 %503, %v613_v5   ;;  %505 = vset.pattern.permute.xlu0 %v540_v11 }
  0x51   :  { %196 = vperm.xlu0 %505, %v613_v5  }
  0x54   :  { %184 = vperm.xlu1 %503, %v625_v7  }
  0x55   :  { %506 = vset.pattern.permute.xlu0 %v541_v12 }
  0x56   :  { %208 = vperm.xlu0 %506, %v619_v6  }
  0x58   :  { %504 = vset.pattern.permute.xlu1 %v540_v11 }
  0x59   :  { %192 = vperm.xlu1 %504, %v619_v6  }
  0x5a   :  { %220 = vperm.xlu0 %506, %v631_v8  }
  0x5d   :  { %200 = vperm.xlu1 %504, %v625_v7  }
  0x5e   :  { %509 = vset.pattern.permute.xlu0 %v542_v13 }
  0x5f   :  { %228 = vperm.xlu0 %509, %v613_v5  }
  0x61   :  { %204 = vperm.xlu1 %504, %v631_v8  }
  0x63   :  { %510 = vset.pattern.permute.xlu0 %v543_v14 }
  0x64   :  { %240 = vperm.xlu0 %510, %v619_v6  }
  0x65   :  { %507 = vset.pattern.permute.xlu1 %v541_v12 }
  0x66   :  { %212 = vperm.xlu1 %507, %v613_v5  }
  0x68   :  { %252 = vperm.xlu0 %510, %v631_v8  }
  0x6a   :  { %216 = vperm.xlu1 %507, %v625_v7  }
  0x6c   :  { %513 = vset.pattern.permute.xlu0 %v544_v15 }
  0x6d   :  { %260 = vperm.xlu0 %513, %v613_v5  }
  0x6e   :  { %508 = vset.pattern.permute.xlu1 %v542_v13 }
  0x6f   :  { %224 = vperm.xlu1 %508, %v619_v6  }
  0x71   :  { %514 = vset.pattern.permute.xlu0 %v545_v16 }
  0x72   :  { %272 = vperm.xlu0 %514, %v619_v6  }
  0x73   :  { %232 = vperm.xlu1 %508, %v625_v7  }
  0x74   :  { %v658_v17 = vpop.permute.xlu1 %24  ;;  %v21_v18 = vpop.permute.xlu0 %20 }
  0x75   :  { %v105_v37 = vsel %vm104_vm0, %v572_v2, %v21_v18  ;;  %v107_v59 = vsel %vm104_vm0, %v566_v0, %v658_v17 }
  0x76   :  { %284 = vperm.xlu0 %514, %v631_v8  }
  0x77   :  { %236 = vperm.xlu1 %508, %v631_v8  }
  0x78   :  { %v662_v19 = vpop.permute.xlu1 %26  ;;  %v23_v20 = vpop.permute.xlu0 %22 }
  0x79   :  { %v106_v47 = vsel %vm104_vm0, %v583_v4, %v23_v20  ;;  %v108_v56 = vsel %vm104_vm0, %v578_v3, %v662_v19  ;;  %v552_v4 = vmov 15  }
  0x7a   :  { %517 = vset.pattern.permute.xlu0 %v546_v21 }
  0x7b   :  { %511 = vset.pattern.permute.xlu1 %v543_v14  ;;  %292 = vperm.xlu0 %517, %v613_v5  }
  0x7c   :  { %244 = vperm.xlu1 %511, %v613_v5   ;;  %v35_v22 = vpop.permute.xlu1 %34  ;;  %v33_v23 = vpop.permute.xlu0 %32 }
  0x7d   :  { %v110_v40 = vsel %vm109_vm1, %v105_v37, %v33_v23  ;;  %v111_v50 = vsel %vm109_vm1, %v106_v47, %v35_v22 }
  0x7f   :  { %518 = vset.pattern.permute.xlu0 %v547_v25 }
  0x80   :  { %248 = vperm.xlu1 %511, %v625_v7   ;;  %v667_v24 = vpop.permute.xlu1 %38  ;;  %v670_v26 = vpop.permute.xlu0 %36  ;;  %304 = vperm.xlu0 %518, %v619_v6  }
  0x81   :  { %v113_v60 = vsel %vm109_vm1, %v108_v56, %v667_v24  ;;  %v112_v63 = vsel %vm109_vm1, %v107_v59, %v670_v26 }
  0x84   :  { %512 = vset.pattern.permute.xlu1 %v544_v15  ;;  %v47_v27 = vpop.permute.xlu1 %46  ;;  %v45_v28 = vpop.permute.xlu0 %44  ;;  %316 = vperm.xlu0 %518, %v631_v8  }
  0x85   :  { %256 = vperm.xlu1 %512, %v619_v6   ;;  %v115_v44 = vsel %vm114_vm2, %v110_v40, %v45_v28  ;;  %v116_v53 = vsel %vm114_vm2, %v111_v50, %v47_v27 }
  0x88   :  { %v675_v29 = vpop.permute.xlu1 %50  ;;  %v677_v30 = vpop.permute.xlu0 %48  ;;  %521 = vset.pattern.permute.xlu0 %v548_v31 }
  0x89   :  { %264 = vperm.xlu1 %512, %v625_v7   ;;  %324 = vperm.xlu0 %521, %v613_v5   ;;  %v118_v1 = vsel %vm114_vm2, %v113_v60, %v675_v29  ;;  %v117_v0 = vsel %vm114_vm2, %v112_v63, %v677_v30 }
  0x8c   :  { %v59_v32 = vpop.permute.xlu1 %58  ;;  %v57_v33 = vpop.permute.xlu0 %56 }
  0x8d   :  { %268 = vperm.xlu1 %512, %v631_v8   ;;  %522 = vset.pattern.permute.xlu0 %v549_v34  ;;  %v120_v48 = vsel %vm119_vm3, %v115_v44, %v57_v33  ;;  %v121_v55 = vsel %vm119_vm3, %v116_v53, %v59_v32 }
  0x8e   :  { %336 = vperm.xlu0 %522, %v619_v6  }
  0x90   :  { %v63_v35 = vpop.permute.xlu1 %62  ;;  %v61_v36 = vpop.permute.xlu0 %60 }
  0x91   :  { %515 = vset.pattern.permute.xlu1 %v545_v16  ;;  %v123_v9 = vsel %vm119_vm3, %v118_v1, %v63_v35  ;;  %v122_v11 = vsel %vm119_vm3, %v117_v0, %v61_v36 }
  0x92   :  { %276 = vperm.xlu1 %515, %v613_v5   ;;  %348 = vperm.xlu0 %522, %v631_v8  }
  0x94   :  { %v71_v38 = vpop.permute.xlu1 %70  ;;  %v69_v39 = vpop.permute.xlu0 %68 }
  0x95   :  { %v125_v51 = vsel %vm124_vm4, %v120_v48, %v69_v39  ;;  %v126_v57 = vsel %vm124_vm4, %v121_v55, %v71_v38 }
  0x96   :  { %280 = vperm.xlu1 %515, %v625_v7   ;;  %525 = vset.pattern.permute.xlu0 %v550_v41 }
  0x97   :  { %356 = vperm.xlu0 %525, %v613_v5  }
  0x98   :  { %v75_v42 = vpop.permute.xlu1 %74  ;;  %v73_v43 = vpop.permute.xlu0 %72 }
  0x99   :  { %v128_v12 = vsel %vm124_vm4, %v123_v9, %v75_v42  ;;  %v127_v13 = vsel %vm124_vm4, %v122_v11, %v73_v43 }
  0x9a   :  { %516 = vset.pattern.permute.xlu1 %v546_v21 }
  0x9b   :  { %288 = vperm.xlu1 %516, %v619_v6   ;;  %526 = vset.pattern.permute.xlu0 %v551_v46 }
  0x9c   :  { %v83_v45 = vpop.permute.xlu1 %82  ;;  %v81_v49 = vpop.permute.xlu0 %80  ;;  %368 = vperm.xlu0 %526, %v619_v6  }
  0x9d   :  { %v130_v58 = vsel %vm129_vm5, %v125_v51, %v81_v49  ;;  %v131_v61 = vsel %vm129_vm5, %v126_v57, %v83_v45 }
  0x9f   :  { %296 = vperm.xlu1 %516, %v625_v7  }
  0xa0   :  { %v87_v52 = vpop.permute.xlu1 %86  ;;  %v85_v54 = vpop.permute.xlu0 %84  ;;  %380 = vperm.xlu0 %526, %v631_v8  }
  0xa1   :  { %v133_v14 = vsel %vm129_vm5, %v128_v12, %v87_v52  ;;  %v132_v16 = vsel %vm129_vm5, %v127_v13, %v85_v54 }
  0xa3   :  { %300 = vperm.xlu1 %516, %v631_v8  }
  0xa4   :  { %v95_v62 = vpop.permute.xlu1 %94  ;;  %v93_v3 = vpop.permute.xlu0 %92  ;;  %529 = vset.pattern.permute.xlu0 %v552_v4 }
  0xa5   :  { %v136_v2 = vsel %vm134_vm6, %v131_v61, %v95_v62  ;;  %v135_v10 = vsel %vm134_vm6, %v130_v58, %v93_v3  ;;  %388 = vperm.xlu0 %529, %v613_v5  }
  0xa6   :  { %457 = vst [vmem:[%s860_s1 + $0x10] sm:$0xff] %v136_v2  ;;  %458 = vst [vmem:[%s860_s1 + $0x18] sm:$0xff] %v136_v2 }
  0xa7   :  { %455 = vst [vmem:[%s860_s1] sm:$0xff] %v135_v10  ;;  %456 = vst [vmem:[%s860_s1 + $0x8] sm:$0xff] %v135_v10  ;;  %519 = vset.pattern.permute.xlu1 %v547_v25 }
  0xa8   :  { %308 = vperm.xlu1 %519, %v613_v5   ;;  %v99_v15 = vpop.permute.xlu1 %98  ;;  %v97_v18 = vpop.permute.xlu0 %96 }
  0xa9   :  { %v138_v17 = vsel %vm134_vm6, %v133_v14, %v99_v15  ;;  %v137_v19 = vsel %vm134_vm6, %v132_v16, %v97_v18 }
  0xaa   :  { %461 = vst [vmem:[%s860_s1 + $0x30] sm:$0xff] %v138_v17  ;;  %462 = vst [vmem:[%s860_s1 + $0x38] sm:$0xff] %v138_v17 }
  0xab   :  { %459 = vst [vmem:[%s860_s1 + $0x20] sm:$0xff] %v137_v19  ;;  %460 = vst [vmem:[%s860_s1 + $0x28] sm:$0xff] %v137_v19 }
  0xac   :  { %312 = vperm.xlu1 %519, %v625_v7  }
  0xb0   :  { %520 = vset.pattern.permute.xlu1 %v548_v31 }
  0xb1   :  { %320 = vperm.xlu1 %520, %v619_v6  }
  0xb5   :  { %328 = vperm.xlu1 %520, %v625_v7  }
  0xb9   :  { %332 = vperm.xlu1 %520, %v631_v8   ;;  %v147_v20 = vpop.permute.xlu1 %146  ;;  %v142_v22 = vpop.permute.xlu0 %141 }
  0xbd   :  { %523 = vset.pattern.permute.xlu1 %v549_v34  ;;  %v152_v21 = vpop.permute.xlu1 %151  ;;  %v157_v24 = vpop.permute.xlu0 %156 }
  0xbe   :  { %340 = vperm.xlu1 %523, %v613_v5  }
  0xc2   :  { %344 = vperm.xlu1 %523, %v625_v7   ;;  %v161_v23 = vpop.permute.xlu1 %160  ;;  %v165_v27 = vpop.permute.xlu0 %164 }
  0xc3   :  { %v400_v43 = vsel %vm104_vm0, %v147_v20, %v165_v27 }
  0xc6   :  { %524 = vset.pattern.permute.xlu1 %v550_v41  ;;  %v169_v25 = vpop.permute.xlu1 %168 }
  0xc7   :  { %352 = vperm.xlu1 %524, %v619_v6   ;;  %v177_v29 = vpop.permute.xlu0 %176  ;;  %v401_v58 = vsel %vm104_vm0, %v152_v21, %v169_v25 }
  0xca   :  { %v173_v26 = vpop.permute.xlu1 %172 }
  0xcb   :  { %360 = vperm.xlu1 %524, %v625_v7   ;;  %v189_v31 = vpop.permute.xlu0 %188  ;;  %v402_v56 = vsel %vm104_vm0, %v157_v24, %v173_v26 }
  0xcc   :  { %v406_v59 = vsel %vm109_vm1, %v402_v56, %v189_v31 }
  0xcf   :  { %364 = vperm.xlu1 %524, %v631_v8   ;;  %v181_v28 = vpop.permute.xlu1 %180 }
  0xd0   :  { %v197_v34 = vpop.permute.xlu0 %196  ;;  %v404_v44 = vsel %vm109_vm1, %v400_v43, %v181_v28 }
  0xd3   :  { %527 = vset.pattern.permute.xlu1 %v551_v46  ;;  %v185_v30 = vpop.permute.xlu1 %184  ;;  %v408_v46 = vsel %vm114_vm2, %v404_v44, %v197_v34 }
  0xd4   :  { %372 = vperm.xlu1 %527, %v613_v5   ;;  %v405_v60 = vsel %vm109_vm1, %v401_v58, %v185_v30 }
  0xd5   :  { %v209_v36 = vpop.permute.xlu0 %208 }
  0xd8   :  { %376 = vperm.xlu1 %527, %v625_v7   ;;  %v193_v32 = vpop.permute.xlu1 %192 }
  0xd9   :  { %v221_v38 = vpop.permute.xlu0 %220 }
  0xdc   :  { %528 = vset.pattern.permute.xlu1 %v552_v4  ;;  %v201_v33 = vpop.permute.xlu1 %200 }
  0xdd   :  { %384 = vperm.xlu1 %528, %v619_v6   ;;  %v409_v63 = vsel %vm114_vm2, %v405_v60, %v201_v33 }
  0xde   :  { %v229_v40 = vpop.permute.xlu0 %228 }
  0xe0   :  { %v205_v35 = vpop.permute.xlu1 %204 }
  0xe1   :  { %392 = vperm.xlu1 %528, %v625_v7   ;;  %v410_v1 = vsel %vm114_vm2, %v406_v59, %v205_v35 }
  0xe2   :  { %v414_v0 = vsel %vm119_vm3, %v410_v1, %v221_v38 }
  0xe3   :  { %v241_v41 = vpop.permute.xlu0 %240 }
  0xe5   :  { %396 = vperm.xlu1 %528, %v631_v8   ;;  %v213_v37 = vpop.permute.xlu1 %212  ;;  %v399_v8 = vsel %vm104_vm0, %v142_v22, %v161_v23 }
  0xe6   :  { %v412_v7 = vsel %vm119_vm3, %v408_v46, %v213_v37  ;;  %v403_v50 = vsel %vm109_vm1, %v399_v8, %v177_v29 }
  0xe7   :  { %v253_v45 = vpop.permute.xlu0 %252  ;;  %v416_v48 = vsel %vm124_vm4, %v412_v7, %v229_v40  ;;  %v407_v52 = vsel %vm114_vm2, %v403_v50, %v193_v32 }
  0xe8   :  { %v411_v55 = vsel %vm119_vm3, %v407_v52, %v209_v36 }
  0xe9   :  { %v217_v39 = vpop.permute.xlu1 %216 }
  0xea   :  { %v413_v3 = vsel %vm119_vm3, %v409_v63, %v217_v39 }
  0xec   :  { %v261_v47 = vpop.permute.xlu0 %260 }
  0xee   :  { %v225_v5 = vpop.permute.xlu1 %224 }
  0xef   :  { %v415_v57 = vsel %vm124_vm4, %v411_v55, %v225_v5 }
  0xf0   :  { %v419_v61 = vsel %vm129_vm5, %v415_v57, %v241_v41 }
  0xf1   :  { %v273_v19 = vpop.permute.xlu0 %272 }
  0xf2   :  { %v233_v42 = vpop.permute.xlu1 %232 }
  0xf3   :  { %v417_v4 = vsel %vm124_vm4, %v413_v3, %v233_v42 }
  0xf5   :  { %v285_v21 = vpop.permute.xlu0 %284 }
  0xf6   :  { %v237_v6 = vpop.permute.xlu1 %236 }
  0xf7   :  { %v418_v11 = vsel %vm124_vm4, %v414_v0, %v237_v6 }
  0xf8   :  { %v422_v13 = vsel %vm129_vm5, %v418_v11, %v253_v45 }
  0xfa   :  { %v293_v24 = vpop.permute.xlu0 %292 }
  0xfb   :  { %v245_v49 = vpop.permute.xlu1 %244 }
  0xfc   :  { %v420_v51 = vsel %vm129_vm5, %v416_v48, %v245_v49 }
  0xfd   :  { %v424_v53 = vsel %vm134_vm6, %v420_v51, %v261_v47 }
  0xfe   :  { %465 = vst [vmem:[%s860_s1 + $0x50] sm:$0xff] %v424_v53 }
  0xff   :  { %v249_v54 = vpop.permute.xlu1 %248  ;;  %v305_v26 = vpop.permute.xlu0 %304 }
 0x100   :  { %v421_v9 = vsel %vm129_vm5, %v417_v4, %v249_v54 }
 0x103   :  { %v317_v27 = vpop.permute.xlu0 %316 }
 0x104   :  { %v257_v62 = vpop.permute.xlu1 %256 }
 0x105   :  { %v423_v2 = vsel %vm134_vm6, %v419_v61, %v257_v62 }
 0x106   :  { %463 = vst [vmem:[%s860_s1 + $0x40] sm:$0xff] %v423_v2 }
 0x108   :  { %v265_v10 = vpop.permute.xlu1 %264  ;;  %v325_v30 = vpop.permute.xlu0 %324 }
 0x109   :  { %v425_v12 = vsel %vm134_vm6, %v421_v9, %v265_v10 }
 0x10a   :  { %467 = vst [vmem:[%s860_s1 + $0x60] sm:$0xff] %v425_v12 }
 0x10c   :  { %v269_v14 = vpop.permute.xlu1 %268 }
 0x10d   :  { %v426_v15 = vsel %vm134_vm6, %v422_v13, %v269_v14  ;;  %v337_v32 = vpop.permute.xlu0 %336 }
 0x10e   :  { %469 = vst [vmem:[%s860_s1 + $0x70] sm:$0xff] %v426_v15 }
 0x111   :  { %v277_v16 = vpop.permute.xlu1 %276  ;;  %v349_v34 = vpop.permute.xlu0 %348 }
 0x112   :  { %v428_v40 = vsel %vm104_vm0, %v277_v16, %v293_v24 }
 0x115   :  { %v281_v17 = vpop.permute.xlu1 %280 }
 0x116   :  { %v357_v36 = vpop.permute.xlu0 %356 }
 0x11a   :  { %v289_v18 = vpop.permute.xlu1 %288 }
 0x11b   :  { %v369_v38 = vpop.permute.xlu0 %368  ;;  %v427_v45 = vsel %vm104_vm0, %v273_v19, %v289_v18 }
 0x11c   :  { %v431_v47 = vsel %vm109_vm1, %v427_v45, %v305_v26 }
 0x11e   :  { %v297_v20 = vpop.permute.xlu1 %296 }
 0x11f   :  { %v381_v41 = vpop.permute.xlu0 %380  ;;  %v429_v54 = vsel %vm104_vm0, %v281_v17, %v297_v20 }
 0x122   :  { %v301_v22 = vpop.permute.xlu1 %300 }
 0x123   :  { %v430_v52 = vsel %vm104_vm0, %v285_v21, %v301_v22 }
 0x124   :  { %v389_v6 = vpop.permute.xlu0 %388  ;;  %v434_v55 = vsel %vm109_vm1, %v430_v52, %v317_v27 }
 0x127   :  { %v309_v23 = vpop.permute.xlu1 %308 }
 0x128   :  { %v432_v5 = vsel %vm109_vm1, %v428_v40, %v309_v23 }
 0x129   :  { %v436_v43 = vsel %vm114_vm2, %v432_v5, %v325_v30 }
 0x12b   :  { %v313_v25 = vpop.permute.xlu1 %312 }
 0x12c   :  { %v433_v56 = vsel %vm109_vm1, %v429_v54, %v313_v25 }
 0x130   :  { %v321_v28 = vpop.permute.xlu1 %320 }
 0x131   :  { %v435_v48 = vsel %vm114_vm2, %v431_v47, %v321_v28 }
 0x132   :  { %v439_v51 = vsel %vm119_vm3, %v435_v48, %v337_v32 }
 0x134   :  { %v329_v29 = vpop.permute.xlu1 %328 }
 0x135   :  { %v437_v59 = vsel %vm114_vm2, %v433_v56, %v329_v29 }
 0x138   :  { %v333_v31 = vpop.permute.xlu1 %332 }
 0x139   :  { %v438_v60 = vsel %vm114_vm2, %v434_v55, %v333_v31 }
 0x13a   :  { %v442_v1 = vsel %vm119_vm3, %v438_v60, %v349_v34 }
 0x13d   :  { %v341_v33 = vpop.permute.xlu1 %340 }
 0x13e   :  { %v440_v44 = vsel %vm119_vm3, %v436_v43, %v341_v33 }
 0x13f   :  { %v444_v46 = vsel %vm124_vm4, %v440_v44, %v357_v36 }
 0x141   :  { %v345_v35 = vpop.permute.xlu1 %344 }
 0x142   :  { %v441_v62 = vsel %vm119_vm3, %v437_v59, %v345_v35 }
 0x146   :  { %v353_v37 = vpop.permute.xlu1 %352 }
 0x147   :  { %v443_v53 = vsel %vm124_vm4, %v439_v51, %v353_v37 }
 0x148   :  { %v447_v57 = vsel %vm129_vm5, %v443_v53, %v369_v38 }
 0x14a   :  { %v361_v39 = vpop.permute.xlu1 %360 }
 0x14b   :  { %v445_v63 = vsel %vm124_vm4, %v441_v62, %v361_v39 }
 0x14e   :  { %v365_v42 = vpop.permute.xlu1 %364 }
 0x14f   :  { %v446_v4 = vsel %vm124_vm4, %v442_v1, %v365_v42 }
 0x150   :  { %v450_v9 = vsel %vm129_vm5, %v446_v4, %v381_v41 }
 0x153   :  { %v373_v7 = vpop.permute.xlu1 %372 }
 0x154   :  { %v448_v8 = vsel %vm129_vm5, %v444_v46, %v373_v7 }
 0x155   :  { %v452_v49 = vsel %vm134_vm6, %v448_v8, %v389_v6 }
 0x156   :  { %466 = vst [vmem:[%s860_s1 + $0x58] sm:$0xff] %v452_v49 }
 0x157   :  { %v377_v50 = vpop.permute.xlu1 %376 }
 0x158   :  { %v449_v2 = vsel %vm129_vm5, %v445_v63, %v377_v50 }
 0x15c   :  { %v385_v58 = vpop.permute.xlu1 %384 }
 0x15d   :  { %v451_v61 = vsel %vm134_vm6, %v447_v57, %v385_v58 }
 0x15e   :  { %464 = vst [vmem:[%s860_s1 + $0x48] sm:$0xff] %v451_v61 }
 0x160   :  { %v393_v3 = vpop.permute.xlu1 %392 }
 0x161   :  { %v453_v0 = vsel %vm134_vm6, %v449_v2, %v393_v3 }
 0x162   :  { %468 = vst [vmem:[%s860_s1 + $0x68] sm:$0xff] %v453_v0 }
 0x164   :  { %v397_v10 = vpop.permute.xlu1 %396 }
 0x165   :  { %v454_v11 = vsel %vm134_vm6, %v450_v9, %v397_v10 }
 0x166   :  { %470 = vst [vmem:[%s860_s1 + $0x78] sm:$0xff] %v454_v11 }

</bundles_post_ra>
